<compile_context>
chip_gen: v5e
topology: v5e:2x2
jax: 0.10.0
libtpu: 0.0.40
codegen_flags: <defaults>
</compile_context>

<pallas_src>
import jax
import jax.numpy as jnp
from jax import lax
from jax.experimental import pallas as pl
from jax.experimental.pallas import tpu as pltpu

_EPS = 1e-12            # F.normalize default eps (applied to the norm)
_EPS_SQ = _EPS * _EPS   # same clamp on the squared norm (f32-representable)

# Below this total element count, XLA fusion beats the pallas_call launch cost.
_PALLAS_MIN_ELEMS = 32 * 1024


def _cosine_sim_kernel(q_ref, p_ref, qs_ref, ps_ref, o_ref):
    # Contract the shared hidden dim of the (TM, D) and (TN, D) tiles directly
    # on the MXU (native dtype, no transpose), accumulating in f32.
    sim = lax.dot_general(
        q_ref[...], p_ref[...],
        dimension_numbers=(((1,), (1,)), ((), ())),
        preferred_element_type=jnp.float32)                        # (TM, TN) f32
    # Rank-1 post-scales (VPU filler hidden under MXU slack):
    #   rows:  1 / (max(||q||, eps) * temperature)   -> (TM, 1)
    #   cols:  1 /  max(||p||, eps)                  -> (1, TN)
    o_ref[...] = (sim * qs_ref[...] * ps_ref[...]).astype(o_ref.dtype)


def _round_up(x: int, m: int) -> int:
    return ((x + m - 1) // m) * m


def _cdiv(a: int, b: int) -> int:
    return (a + b - 1) // b


def _vmem_budget_bytes() -> int:
    """Per-generation VMEM budget (leaves headroom for compiler scratch)."""
    try:
        phys = int(pltpu.get_tpu_info().vmem_capacity_bytes)
    except Exception:
        phys = 64 * 1024 * 1024          # conservative default (v7x per-TC VMEM)
    return min((phys * 3) // 4, 96 * 1024 * 1024)


def _select_tiles(n_q, n_p, d, in_bytes, out_bytes, row_align, budget):
    """Pick (tm, tn) so double-buffered blocks fit the VMEM budget."""
    tm = min(1024, _round_up(n_q, row_align))
    tn = min(4096, _round_up(n_p, 128))

    def blocks_bytes(tm_, tn_):
        # Double-buffered q/p/out blocks + the two tiny f32 scale blocks.
        return 2 * ((tm_ * d + tn_ * d) * in_bytes
                    + tm_ * tn_ * out_bytes
                    + (tm_ + tn_) * 4)

    usable = int(budget * 0.8)
    while blocks_bytes(tm, tn) > usable and (tm > row_align or tn > 128):
        if tm >= tn and tm > row_align:
            tm = max(row_align, _round_up(tm // 2, row_align))
        elif tn > 128:
            tn = max(128, _round_up(tn // 2, 128))
        else:
            tm = max(row_align, _round_up(tm // 2, row_align))

    # Keep >=2 blocks along one "parallel" axis so both v7x TensorCores get work
    # (harmless on single-core v5e/v6e).
    if _cdiv(n_q, tm) * _cdiv(n_p, tn) == 1:
        if n_q > row_align:
            tm = _round_up(_cdiv(n_q, 2), row_align)
        elif n_p > 128:
            tn = _round_up(_cdiv(n_p, 2), 128)
    return tm, tn


def _reference_cosine_sim(query_embeds, paper_embeds, temperature):
    """Plain-JAX reference / tiny-size fallback (matches F.normalize semantics)."""
    out_dtype = jnp.result_type(query_embeds.dtype, paper_embeds.dtype)
    q = query_embeds.astype(jnp.float32)
    p = paper_embeds.astype(jnp.float32)
    qn = q / jnp.maximum(jnp.linalg.norm(q, axis=1, keepdims=True), _EPS)
    pn = p / jnp.maximum(jnp.linalg.norm(p, axis=1, keepdims=True), _EPS)
    return ((qn @ pn.T) / temperature).astype(out_dtype)


def cosine_similarity_scorer(query_embeds: jax.Array,
                             paper_embeds: jax.Array,
                             temperature: float = 0.1,
                             *,
                             matmul_dtype=None) -> jax.Array:
    """Pallas equivalent of CosineSimilarityScorer.forward."""
    n_q, d = query_embeds.shape
    n_p, d2 = paper_embeds.shape
    assert d == d2, "hidden dims must match"

    out_dtype = jnp.result_type(query_embeds.dtype, paper_embeds.dtype)

    # Tiny problems: pallas_call launch overhead dominates; let XLA fuse it.
    if n_q * d + n_p * d + n_q * n_p < _PALLAS_MIN_ELEMS:
        return _reference_cosine_sim(query_embeds, paper_embeds, temperature)

    # ---- Hoisted norm math (one fused pass per input, nothing per-tile). ----
    q32 = query_embeds.astype(jnp.float32)
    p32 = paper_embeds.astype(jnp.float32)
    # rsqrt(max(||x||^2, eps^2)) == 1 / max(||x||, eps); EUP rsqrt, no divide.
    q_scale = lax.rsqrt(jnp.maximum(
        jnp.sum(q32 * q32, axis=1, keepdims=True), _EPS_SQ)) * (1.0 / temperature)
    p_scale = lax.rsqrt(jnp.maximum(
        jnp.sum(p32 * p32, axis=1, keepdims=True), _EPS_SQ)).T     # (1, N_p)

    # Optional one-time operand cast (e.g. f32 -> bf16 for MXU throughput).
    q = query_embeds if matmul_dtype is None else query_embeds.astype(matmul_dtype)
    p = paper_embeds if matmul_dtype is None else paper_embeds.astype(matmul_dtype)

    in_bytes = max(jnp.dtype(q.dtype).itemsize, jnp.dtype(p.dtype).itemsize)
    out_bytes = jnp.dtype(out_dtype).itemsize
    # Sub-32-bit dtypes pack rows along sublanes: align tm to 16 (bf16) / 32 (8-bit).
    min_itemsize = min(jnp.dtype(q.dtype).itemsize, jnp.dtype(out_dtype).itemsize)
    row_align = 8 * max(1, 4 // min_itemsize)

    vmem_budget = _vmem_budget_bytes()
    tm, tn = _select_tiles(n_q, n_p, d, in_bytes, out_bytes, row_align, vmem_budget)
    grid = (_cdiv(n_q, tm), _cdiv(n_p, tn))

    # Advisory cost hint for the XLA scheduler.
    cost = pl.CostEstimate(
        flops=int(2 * n_q * n_p * d),
        transcendentals=0,
        bytes_accessed=int(n_q * d * jnp.dtype(q.dtype).itemsize
                           + grid[0] * n_p * d * jnp.dtype(p.dtype).itemsize
                           + n_q * n_p * out_bytes),
    )

    # TODO(synk): for very large hidden dims (D >= ~8K f32) add an innermost
    # "arbitrary" K grid axis with an f32 VMEM accumulator instead of relying
    # on tile shrinking alone.
    return pl.pallas_call(
        _cosine_sim_kernel,
        out_shape=jax.ShapeDtypeStruct((n_q, n_p), out_dtype),
        grid_spec=pltpu.PrefetchScalarGridSpec(
            num_scalar_prefetch=0,
            grid=grid,
            in_specs=[
                pl.BlockSpec((tm, d), lambda i, j: (i, 0)),   # query tile (resident across j)
                pl.BlockSpec((tn, d), lambda i, j: (j, 0)),   # paper tile
                pl.BlockSpec((tm, 1), lambda i, j: (i, 0)),   # 1/(||q||*T) row scale
                pl.BlockSpec((1, tn), lambda i, j: (0, j)),   # 1/||p||     col scale
            ],
            out_specs=pl.BlockSpec((tm, tn), lambda i, j: (i, j)),
        ),
        compiler_params=pltpu.CompilerParams(
            # Independent output tiles along both axes -> megacore-shardable.
            dimension_semantics=("parallel", "parallel"),
            vmem_limit_bytes=int(vmem_budget),
        ),
        cost_estimate=cost,
    )(q, p, q_scale, p_scale)


if __name__ == "__main__":
    key = jax.random.PRNGKey(0)
    kq, kp = jax.random.split(key)

    # Non-tile-aligned shapes: exercises the non-divisible grid (masked edge
    # blocks) and the 1x1 -> 2x1 megacore split, without any pad/slice copies.
    n_queries, n_papers, hidden = 200, 500, 128
    temperature = 0.07
    query_embeds = jax.random.normal(kq, (n_queries, hidden), dtype=jnp.float32)
    paper_embeds = jax.random.normal(kp, (n_papers, hidden), dtype=jnp.float32)

    sim = cosine_similarity_scorer(query_embeds, paper_embeds, temperature)
    sim = jax.block_until_ready(sim)
    ref = _reference_cosine_sim(query_embeds, paper_embeds, temperature)
    assert sim.shape == (n_queries, n_papers)
    assert jnp.allclose(sim, ref, atol=1e-3, rtol=1e-4), "f32 mismatch vs reference"

    # bf16 inputs: native bf16 MXU path, tm aligned to 16 rows.
    q_bf = query_embeds.astype(jnp.bfloat16)
    p_bf = paper_embeds.astype(jnp.bfloat16)
    sim_bf = jax.block_until_ready(cosine_similarity_scorer(q_bf, p_bf, temperature))
    ref_bf = _reference_cosine_sim(q_bf, p_bf, temperature)
    assert sim_bf.dtype == jnp.bfloat16 and sim_bf.shape == (n_queries, n_papers)
    assert jnp.allclose(sim_bf.astype(jnp.float32), ref_bf.astype(jnp.float32),
                        atol=5e-2, rtol=2e-2), "bf16 mismatch vs reference"

    # Tiny problem goes through the size-gated plain-jnp fallback.
    qs = jax.random.normal(kq, (8, 32), dtype=jnp.float32)
    ps = jax.random.normal(kp, (16, 32), dtype=jnp.float32)
    sim_small = jax.block_until_ready(cosine_similarity_scorer(qs, ps, 0.1))
    ref_small = _reference_cosine_sim(qs, ps, 0.1)
    assert sim_small.shape == (8, 16)
    assert jnp.allclose(sim_small, ref_small, atol=1e-3, rtol=1e-4)

    print("KERNEL_OK")
</pallas_src>

<mosaic_0001>
module attributes {stable_mosaic.version = 11 : i64} {
  func.func @_cosine_sim_kernel(%arg0: i32, %arg1: i32, %arg2: memref<104x128xf32, #tpu.memory_space<vmem>>, %arg3: memref<512x128xf32, #tpu.memory_space<vmem>>, %arg4: memref<104x1xf32, #tpu.memory_space<vmem>>, %arg5: memref<1x512xf32, #tpu.memory_space<vmem>>, %arg6: memref<104x512xf32, #tpu.memory_space<vmem>>) attributes {dimension_semantics = [#tpu.dimension_semantics<parallel>, #tpu.dimension_semantics<parallel>], iteration_bounds = array<i64: 2, 1>, scalar_prefetch = 0 : i64, scratch_operands = 0 : i64, tpu.core_type = #tpu.core_type<tc>, window_params = [{transform_indices = @transform_0, window_bounds = array<i64: 104, 128>}, {transform_indices = @transform_1, window_bounds = array<i64: 512, 128>}, {transform_indices = @transform_2, window_bounds = array<i64: 104, 1>}, {transform_indices = @transform_3, window_bounds = array<i64: 1, 512>}, {transform_indices = @transform_4, window_bounds = array<i64: 104, 512>}]} {
    %c0 = arith.constant 0 : index
    %c0_0 = arith.constant 0 : index
    %0 = vector.load %arg2[%c0, %c0_0] : memref<104x128xf32, #tpu.memory_space<vmem>>, vector<104x128xf32>
    %c0_1 = arith.constant 0 : index
    %c0_2 = arith.constant 0 : index
    %1 = vector.load %arg3[%c0_1, %c0_2] : memref<512x128xf32, #tpu.memory_space<vmem>>, vector<512x128xf32>
    %cst = arith.constant dense<0.000000e+00> : vector<104x512xf32>
    %2 = tpu.matmul %0, %1, %cst {dimension_numbers = #tpu.dot_dimension_numbers<[1], [1], [0], [0], [0, 0, 1, 0], [], []>} : vector<104x128xf32>, vector<512x128xf32>, vector<104x512xf32> -> vector<104x512xf32>
    %c0_3 = arith.constant 0 : index
    %c0_4 = arith.constant 0 : index
    %3 = vector.load %arg4[%c0_3, %c0_4] : memref<104x1xf32, #tpu.memory_space<vmem>>, vector<104x1xf32>
    %4 = vector.broadcast %3 : vector<104x1xf32> to vector<104x512xf32>
    %5 = arith.mulf %2, %4 : vector<104x512xf32>
    %c0_5 = arith.constant 0 : index
    %c0_6 = arith.constant 0 : index
    %6 = vector.load %arg5[%c0_5, %c0_6] : memref<1x512xf32, #tpu.memory_space<vmem>>, vector<1x512xf32>
    %7 = vector.broadcast %6 : vector<1x512xf32> to vector<104x512xf32>
    %8 = arith.mulf %5, %7 : vector<104x512xf32>
    %c0_7 = arith.constant 0 : index
    %c0_8 = arith.constant 0 : index
    %9 = vector.load %arg6[%c0_7, %c0_8] : memref<104x512xf32, #tpu.memory_space<vmem>>, vector<104x512xf32>
    tpu.vector_store %arg6[%c0_7, %c0_8], %8 {strides = array<i32>} : memref<104x512xf32, #tpu.memory_space<vmem>>, vector<104x512xf32>,
    return
  }
  func.func @transform_0(%arg0: i32, %arg1: i32) -> (i32, i32) {
    %c0_i32 = arith.constant 0 : i32
    %c0_i32_0 = arith.constant 0 : i32
    return %arg0, %c0_i32 : i32, i32
  }
  func.func @transform_1(%arg0: i32, %arg1: i32) -> (i32, i32) {
    %c0_i32 = arith.constant 0 : i32
    %c0_i32_0 = arith.constant 0 : i32
    return %arg1, %c0_i32 : i32, i32
  }
  func.func @transform_2(%arg0: i32, %arg1: i32) -> (i32, i32) {
    %c0_i32 = arith.constant 0 : i32
    %c0_i32_0 = arith.constant 0 : i32
    return %arg0, %c0_i32 : i32, i32
  }
  func.func @transform_3(%arg0: i32, %arg1: i32) -> (i32, i32) {
    %c0_i32 = arith.constant 0 : i32
    %c0_i32_0 = arith.constant 0 : i32
    return %c0_i32, %arg1 : i32, i32
  }
  func.func @transform_4(%arg0: i32, %arg1: i32) -> (i32, i32) {
    %c0_i32 = arith.constant 0 : i32
    return %arg0, %arg1 : i32, i32
  }
}

</mosaic_0001>

<bundles_post_ra>
// kernel: tpu_custom_call.1
= control target key start
LH: loop header
LB: loop body
LE: loop exit
PB: predicated region body
PF: predicated region fallthrough
CT: control target
= control target key end

     0   :  { %9 = vsyncpa [#allocation3], 0  ;;  %s1564_s0 = inlined_call_operand.vmem [shape: f32[200,128], index: 0, kind: input, shape index: {}]   ;;  %s1565_s1 = inlined_call_operand.hbm [shape: f32[500,128], index: 1, kind: input, shape index: {}]   ;;  %s1566_s2 = inlined_call_operand.vmem [shape: f32[200,1], index: 2, kind: input, shape index: {}]   ;;  %s1567_s3 = inlined_call_operand.vmem [shape: f32[1,500], index: 3, kind: input, shape index: {}]   ;;  %s1568_s4 = inlined_call_operand.hbm [shape: f32[200,500], index: 4, kind: output, shape index: {}]  }
   0x1   :  { %10 = vsyncpa [#allocation4], 0 }
   0x2   :  { %12 = vsyncpa [#allocation4 + $0x1], 0  ;;  %s1257_s15 = smov 0   ;;  %s1259_s16 = smov 0  }
   0x3   :  { %s1261_s17 = smov 0   ;;  %s1263_s18 = smov 0  }
   0x4   :  { %s1265_s19 = smov 0   ;;  %s1267_s20 = smov 0  }
   0x5 LB: > { %s1288_s21 = sadd.s32 4294967295, %s1223_s20   ;;  %s1017_s22 = sadd.s32 4294967294, %s1223_s20   ;;  %s1223_s20 = sphi %s1267_s20, %s18_s20   ;;  %s1219_s19 = sphi %s1265_s19, %s1577_s19   ;;  %s1215_s18 = sphi %s1263_s18, %s1576_s18   ;;  %s1211_s17 = sphi %s1261_s17, %s1575_s17   ;;  %s1207_s16 = sphi %s1259_s16, %s1574_s16   ;;  %s1203_s15 = sphi %s1257_s15, %s1573_s15  }
   0x6   : > { %s30_s23 = sadd.s32 1, %s1219_s19  ;;  %s143_s24 = sadd.s32 1, %s1211_s17 }
   0x7   : > { %p32_p0 = scmp.ge.s32.totalorder %s30_s23, 2  ;;  %p153_p1 = scmp.ne.s32.totalorder %s1211_s17, %s1207_s16 }
   0x8   : > { %p154_p2 = scmp.eq.s32.totalorder %s1288_s21, 1  ;;  %p159_p3 = scmp.ne.s32.totalorder %s1207_s16, %s1203_s15 }
   0x9   : > { %s1579_s23 = smov (%p32_p0, %s30_s23), 0  ;;  %p160_p5 = scmp.eq.s32.totalorder %s1017_s22, 1 }
   0xa   : > { %p1300_p4 = por %p154_p2, %p153_p1  ;;  %s138_s26 = ssub.s32 %s1219_s19, %s1579_s23 }
   0xb   : > { %p1018_p6 = scmp.ge.s32.totalorder %s1223_s20, 1  ;;  %p141_p7 = scmp.eq.s32.totalorder %s138_s26, 0 }
   0xc   : > { %p1307_p8 = por %p160_p5, %p159_p3  ;;  %p167_p9 = scmp.lt.s32.totalorder %s1223_s20, 3 }
   0xd   : > { %s1313_s28 = scalar_select %p141_p7, %s1211_s17, %s143_s24  }
   0xe   : > { %p1315_p10 = pnand %p1018_p6, %p167_p9 }
   0xf   : > { %p1019_p11 = scmp.ne.s32.totalorder (!%p1315_p10), %s1288_s21, 0 }
  0x10   : > { %171 = sbr.rel (%p1315_p10) target bundleno = 30 (0x1e), region = 12 }
  0x15   : > { %175 = sbr.rel (%p1019_p11) target bundleno = 30 (0x1e), region = 16 }
  0x1a   : > { %181 = vsyncadd [#allocation3], 128  ;;  %s186_s6 = sshll.u32 %s1565_s1, 4  ;;  %s1225_s7 = smov [#allocation2]   ;;  %s187_s6 = int_to_ptr.hbm [resolvable:$true] %s186_s6 }
  0x1b   : > { %s188_s8 = sshll.u32 %s1225_s7, 4  ;;  %s1226_s9 = smov 128   ;;  %s189_s8 = int_to_ptr.vmem [resolvable:$true] %s188_s8 }
  0x1c   : > { %s1227_s10 = smov 8  }
  0x1d   : > { %194 = dma.hbm_to_vmem [thread:$0]  %s187_s6, 8064, %s189_s8, [#allocation3], %s1226_s9, %s1226_s9, %s1227_s10  }
  0x1e PF: > { %246 = sbr.rel (%p1315_p10) target bundleno = 367 (0x16f), region = 36  ;;  %p1047_p12 = scmp.eq.s32.totalorder (!%p1315_p10), %s1288_s21, 0 }
  0x23   : > { %1194 = dma.done.wait (%p1047_p12), [#allocation3], 8192  }
  0x24   : > { %1196 = vsyncadd (%p1047_p12), [#allocation3], 4294959104  ;;  %v361_v0 = vld [vmem:[#allocation2 + $0x78] sm:$0xff]  ;;  %v360_v4 = vld [vmem:[#allocation2 + $0x70] sm:$0xff]  ;;  %s1329_s11 = smul.u32 13, %s1215_s18  ;;  %v1228_v48 = vmov 0  }
  0x25   : > { %v377_v1 = vld [vmem:[#allocation2 + $0xf8] sm:$0xff]  ;;  %410 = vmatpush.xpose.msra.mxu0 %v361_v0  ;;  %v376_v5 = vld [vmem:[#allocation2 + $0xf0] sm:$0xff]  ;;  %v359_v8 = vld [vmem:[#allocation2 + $0x68] sm:$0xff]  ;;  %1103 = vset.pattern.permute.xlu0 %v1228_v48  ;;  %s287_s30 = sand.u32 1, %s1207_s16  }
  0x26   : > { %v393_v2 = vld [vmem:[#allocation2 + $0x178] sm:$0xff]  ;;  %466 = vmatpush.xpose.msra.mxu1 %v377_v1  ;;  %v392_v6 = vld [vmem:[#allocation2 + $0x170] sm:$0xff]  ;;  %v375_v9 = vld [vmem:[#allocation2 + $0xe8] sm:$0xff]  ;;  %p295_p13 = scmp.lt.s32.totalorder %s1329_s11, 24  ;;  %1104 = vset.pattern.permute.xlu1 %v1228_v48  ;;  %s1039_s7 = smul.u32 416, %s287_s30 }
  0x27   : > { %v409_v3 = vld [vmem:[#allocation2 + $0x1f8] sm:$0xff]  ;;  %522 = vmatpush.xpose.msra.mxu2 %v393_v2  ;;  %v408_v7 = vld [vmem:[#allocation2 + $0x1f0] sm:$0xff]  ;;  %v391_v10 = vld [vmem:[#allocation2 + $0x168] sm:$0xff]  ;;  %1105 = vset.pattern.permute.xlu2 %v1228_v48  ;;  %s1498_s9 = scalar_lea.sflag [#allocation4], %s287_s30  ;;  %s888_s10 = ssub.s32 (%p1300_p4), 25, %s1329_s11 }
  0x28   : > { %578 = vmatpush.xpose.msra.mxu3 %v409_v3  ;;  %v407_v11 = vld [vmem:[#allocation2 + $0x1e8] sm:$0xff]  ;;  %v358_v12 = vld [vmem:[#allocation2 + $0x60] sm:$0xff]  ;;  %v357_v16 = vld [vmem:[#allocation2 + $0x58] sm:$0xff]  ;;  %s1333_s12 = scalar_select %p295_p13, %s1329_s11, 24 }
  0x29   : > { %411 = vmatpush.xpose.msra.mxu0 %v360_v4  ;;  %v374_v13 = vld [vmem:[#allocation2 + $0xe0] sm:$0xff]  ;;  %v373_v17 = vld [vmem:[#allocation2 + $0xd8] sm:$0xff]  ;;  %v356_v20 = vld [vmem:[#allocation2 + $0x50] sm:$0xff]  ;;  %s1388_s8 = scalar_lea.vmem [#allocation5], %s1039_s7  ;;  %p889_p0 = scmp.lt.s32.totalorder (%p1300_p4), %s888_s10, 13 }
  0x2a   : > { %467 = vmatpush.xpose.msra.mxu1 %v376_v5  ;;  %v390_v14 = vld [vmem:[#allocation2 + $0x160] sm:$0xff]  ;;  %v389_v18 = vld [vmem:[#allocation2 + $0x158] sm:$0xff]  ;;  %v372_v21 = vld [vmem:[#allocation2 + $0xd0] sm:$0xff]  ;;  %s1024_s13 = sshll.u32 %s1333_s12, 3 }
  0x2b   : > { %523 = vmatpush.xpose.msra.mxu2 %v392_v6  ;;  %v406_v15 = vld [vmem:[#allocation2 + $0x1e0] sm:$0xff]  ;;  %v405_v19 = vld [vmem:[#allocation2 + $0x1d8] sm:$0xff]  ;;  %v388_v22 = vld [vmem:[#allocation2 + $0x150] sm:$0xff]  ;;  %s1341_s22 = scalar_lea.vmem %s1566_s2, %s1024_s13  ;;  %s1350_s29 = scalar_lea.vmem %s1564_s0, %s1024_s13 }
  0x2c   : > { %579 = vmatpush.xpose.msra.mxu3 %v408_v7  ;;  %v404_v23 = vld [vmem:[#allocation2 + $0x1d0] sm:$0xff]  ;;  %v355_v24 = vld [vmem:[#allocation2 + $0x48] sm:$0xff]  ;;  %v354_v28 = vld [vmem:[#allocation2 + $0x40] sm:$0xff] }
  0x2d   : > { %412 = vmatpush.xpose.msra.mxu0 %v359_v8  ;;  %v371_v25 = vld [vmem:[#allocation2 + $0xc8] sm:$0xff]  ;;  %v370_v29 = vld [vmem:[#allocation2 + $0xc0] sm:$0xff]  ;;  %v353_v32 = vld [vmem:[#allocation2 + $0x38] sm:$0xff] }
  0x2e   : > { %468 = vmatpush.xpose.msra.mxu1 %v375_v9  ;;  %v387_v26 = vld [vmem:[#allocation2 + $0x148] sm:$0xff]  ;;  %v386_v30 = vld [vmem:[#allocation2 + $0x140] sm:$0xff]  ;;  %v369_v33 = vld [vmem:[#allocation2 + $0xb8] sm:$0xff] }
  0x2f   : > { %524 = vmatpush.xpose.msra.mxu2 %v391_v10  ;;  %v403_v27 = vld [vmem:[#allocation2 + $0x1c8] sm:$0xff]  ;;  %v402_v31 = vld [vmem:[#allocation2 + $0x1c0] sm:$0xff]  ;;  %v385_v34 = vld [vmem:[#allocation2 + $0x138] sm:$0xff] }
  0x30   : > { %580 = vmatpush.xpose.msra.mxu3 %v407_v11  ;;  %v401_v35 = vld [vmem:[#allocation2 + $0x1b8] sm:$0xff]  ;;  %v352_v36 = vld [vmem:[#allocation2 + $0x30] sm:$0xff]  ;;  %v351_v40 = vld [vmem:[#allocation2 + $0x28] sm:$0xff] }
  0x31   : > { %413 = vmatpush.xpose.msra.mxu0 %v358_v12  ;;  %v368_v37 = vld [vmem:[#allocation2 + $0xb0] sm:$0xff]  ;;  %v367_v41 = vld [vmem:[#allocation2 + $0xa8] sm:$0xff]  ;;  %v350_v44 = vld [vmem:[#allocation2 + $0x20] sm:$0xff] }
  0x32   : > { %469 = vmatpush.xpose.msra.mxu1 %v374_v13  ;;  %v384_v38 = vld [vmem:[#allocation2 + $0x130] sm:$0xff]  ;;  %v383_v42 = vld [vmem:[#allocation2 + $0x128] sm:$0xff]  ;;  %v366_v45 = vld [vmem:[#allocation2 + $0xa0] sm:$0xff] }
  0x33   : > { %525 = vmatpush.xpose.msra.mxu2 %v390_v14  ;;  %v400_v39 = vld [vmem:[#allocation2 + $0x1b0] sm:$0xff]  ;;  %v399_v43 = vld [vmem:[#allocation2 + $0x1a8] sm:$0xff]  ;;  %v382_v46 = vld [vmem:[#allocation2 + $0x120] sm:$0xff] }
  0x34   : > { %581 = vmatpush.xpose.msra.mxu3 %v406_v15  ;;  %v398_v47 = vld [vmem:[#allocation2 + $0x1a0] sm:$0xff]  ;;  %v349_v49 = vld [vmem:[#allocation2 + $0x18] sm:$0xff]  ;;  %v348_v54 = vld [vmem:[#allocation2 + $0x10] sm:$0xff] }
  0x35   : > { %414 = vmatpush.xpose.msra.mxu0 %v357_v16  ;;  %v365_v50 = vld [vmem:[#allocation2 + $0x98] sm:$0xff]  ;;  %v634_v53 = vld [vmem:[%s1341_s22] sm:$0xff]  ;;  %v364_v55 = vld [vmem:[#allocation2 + $0x90] sm:$0xff] }
  0x36   : > { %470 = vmatpush.xpose.msra.mxu1 %v373_v17  ;;  %v381_v51 = vld [vmem:[#allocation2 + $0x118] sm:$0xff]  ;;  %v380_v56 = vld [vmem:[#allocation2 + $0x110] sm:$0xff]  ;;  %649 = vperm.xlu0 %1103, %v634_v53   ;;  %v347_v58 = vld [vmem:[#allocation2 + $0x8] sm:$0xff] }
  0x37   : > { %526 = vmatpush.xpose.msra.mxu2 %v389_v18  ;;  %v397_v52 = vld [vmem:[#allocation2 + $0x198] sm:$0xff]  ;;  %v396_v57 = vld [vmem:[#allocation2 + $0x190] sm:$0xff]  ;;  %v363_v59 = vld [vmem:[#allocation2 + $0x88] sm:$0xff] }
  0x38   : > { %582 = vmatpush.xpose.msra.mxu3 %v405_v19  ;;  %v379_v60 = vld [vmem:[#allocation2 + $0x108] sm:$0xff]  ;;  %v346_v63 = vld [vmem:[#allocation2] sm:$0xff]  ;;  %v636_v4 = vld [vmem:[%s1341_s22 + $0x10] sm:$0xff] }
  0x39   : > { %415 = vmatpush.xpose.msra.mxu0 %v356_v20  ;;  %v395_v61 = vld [vmem:[#allocation2 + $0x188] sm:$0xff]  ;;  %v362_v0 = vld [vmem:[#allocation2 + $0x80] sm:$0xff]  ;;  %659 = vperm.xlu1 %1104, %v636_v4   ;;  %v637_v6 = vld [vmem:[%s1341_s22 + $0x18] sm:$0xff] }
  0x3a   : > { %471 = vmatpush.xpose.msra.mxu1 %v372_v21  ;;  %v635_v62 = vld [vmem:[%s1341_s22 + $0x8] sm:$0xff]  ;;  %v378_v1 = vld [vmem:[#allocation2 + $0x100] sm:$0xff]  ;;  %v335_v7 = vld [vmem:[%s1350_s29 + $0x10] sm:$0xff] }
  0x3b   : > { %527 = vmatpush.xpose.msra.mxu2 %v388_v22  ;;  %v394_v2 = vld [vmem:[#allocation2 + $0x180] sm:$0xff]  ;;  %v334_v5 = vld [vmem:[%s1350_s29 + $0x8] sm:$0xff]  ;;  %v336_v8 = vld [vmem:[%s1350_s29 + $0x18] sm:$0xff] }
  0x3c   : > { %583 = vmatpush.xpose.msra.mxu3 %v404_v23  ;;  %v333_v3 = vld [vmem:[%s1350_s29] sm:$0xff]  ;;  %v640_v10 = vld [vmem:[%s1341_s22 + $0x30] sm:$0xff]  ;;  %v338_v11 = vld [vmem:[%s1350_s29 + $0x28] sm:$0xff] }
  0x3d   : > { %416 = vmatpush.xpose.msra.mxu0 %v355_v24  ;;  %v337_v9 = vld [vmem:[%s1350_s29 + $0x20] sm:$0xff]  ;;  %v641_v13 = vld [vmem:[%s1341_s22 + $0x38] sm:$0xff]  ;;  %v643_v14 = vld [vmem:[%s1341_s22 + $0x48] sm:$0xff] }
  0x3e   : > { %472 = vmatpush.xpose.msra.mxu1 %v371_v25  ;;  %654 = vperm.xlu0 %1103, %v635_v62   ;;  %v638_v12 = vld [vmem:[%s1341_s22 + $0x20] sm:$0xff]  ;;  %v339_v15 = vld [vmem:[%s1350_s29 + $0x30] sm:$0xff]  ;;  %v639_v16 = vld [vmem:[%s1341_s22 + $0x28] sm:$0xff] }
  0x3f   : > { %528 = vmatpush.xpose.msra.mxu2 %v387_v26  ;;  %669 = vperm.xlu2 %1105, %v638_v12   ;;  %v646_v17 = vld [vmem:[%s1341_s22 + $0x60] sm:$0xff]  ;;  %v340_v18 = vld [vmem:[%s1350_s29 + $0x38] sm:$0xff]  ;;  %v644_v19 = vld [vmem:[%s1341_s22 + $0x50] sm:$0xff] }
  0x40   : > { %584 = vmatpush.xpose.msra.mxu3 %v403_v27  ;;  %v341_v20 = vld [vmem:[%s1350_s29 + $0x40] sm:$0xff]  ;;  %v342_v22 = vld [vmem:[%s1350_s29 + $0x48] sm:$0xff]  ;;  %v645_v23 = vld [vmem:[%s1341_s22 + $0x58] sm:$0xff] }
  0x41   : > { %417 = vmatpush.xpose.msra.mxu0 %v354_v28  ;;  %664 = vperm.xlu1 %1104, %v637_v6   ;;  %v642_v21 = vld [vmem:[%s1341_s22 + $0x40] sm:$0xff]  ;;  %v343_v24 = vld [vmem:[%s1350_s29 + $0x50] sm:$0xff]  ;;  %v344_v25 = vld [vmem:[%s1350_s29 + $0x58] sm:$0xff] }
  0x42   : > { %473 = vmatpush.xpose.msra.mxu1 %v370_v29  ;;  %v345_v26 = vld [vmem:[%s1350_s29 + $0x60] sm:$0xff] }
  0x43   : > { %529 = vmatpush.xpose.msra.mxu2 %v386_v30  ;;  %v764_v27 = vld [vmem:[%s1567_s3] sm:$0xf] }
  0x44   : > { %585 = vmatpush.xpose.msra.mxu3 %v402_v31  ;;  %v1382_v29 = vperm.slane %v764_v27, 0  ;;  %v1384_v30 = vperm.slane %v764_v27, 1 }
  0x45   : > { %418 = vmatpush.xpose.msra.mxu0 %v353_v32 }
  0x46   : > { %474 = vmatpush.xpose.msra.mxu1 %v369_v33  ;;  %679 = vperm.xlu0 %1103, %v640_v10  }
  0x47   : > { %530 = vmatpush.xpose.msra.mxu2 %v385_v34  ;;  %674 = vperm.xlu2 %1105, %v639_v16  }
  0x48   : > { %586 = vmatpush.xpose.msra.mxu3 %v401_v35 }
  0x49   : > { %419 = vmatpush.xpose.msra.mxu0 %v352_v36  ;;  %684 = vperm.xlu1 %1104, %v641_v13  }
  0x4a   : > { %475 = vmatpush.xpose.msra.mxu1 %v368_v37  ;;  %v1392_v37 = vperm.slane %v764_v27, 2 }
  0x4b   : > { %531 = vmatpush.xpose.msra.mxu2 %v384_v38  ;;  %v1394_v38 = vperm.slane %v764_v27, 3 }
  0x4c   : > { %587 = vmatpush.xpose.msra.mxu3 %v400_v39 }
  0x4d   : > { %420 = vmatpush.xpose.msra.mxu0 %v351_v40 }
  0x4e   : > { %476 = vmatpush.xpose.msra.mxu1 %v367_v41  ;;  %694 = vperm.xlu0 %1103, %v643_v14  }
  0x4f   : > { %532 = vmatpush.xpose.msra.mxu2 %v383_v42  ;;  %689 = vperm.xlu2 %1105, %v642_v21  }
  0x50   : > { %588 = vmatpush.xpose.msra.mxu3 %v399_v43 }
  0x51   : > { %421 = vmatpush.xpose.msra.mxu0 %v350_v44  ;;  %699 = vperm.xlu1 %1104, %v644_v19  }
  0x52   : > { %477 = vmatpush.xpose.msra.mxu1 %v366_v45 }
  0x53   : > { %533 = vmatpush.xpose.msra.mxu2 %v382_v46 }
  0x54   : > { %589 = vmatpush.xpose.msra.mxu3 %v398_v47 }
  0x55   : > { %422 = vmatpush.xpose.msra.mxu0 %v349_v49 }
  0x56   : > { %478 = vmatpush.xpose.msra.mxu1 %v365_v50  ;;  %709 = vperm.xlu0 %1103, %v646_v17  }
  0x57   : > { %534 = vmatpush.xpose.msra.mxu2 %v381_v51  ;;  %704 = vperm.xlu2 %1105, %v645_v23  }
  0x58   : > { %590 = vmatpush.xpose.msra.mxu3 %v397_v52 }
  0x59   : > { %423 = vmatpush.xpose.msra.mxu0 %v348_v54 }
  0x5a   : > { %479 = vmatpush.xpose.msra.mxu1 %v364_v55 }
  0x5b   : > { %535 = vmatpush.xpose.msra.mxu2 %v380_v56 }
  0x5c   : > { %591 = vmatpush.xpose.msra.mxu3 %v396_v57 }
  0x5d   : > { %424 = vmatpush.xpose.msra.mxu0 %v347_v58 }
  0x5e   : > { %480 = vmatpush.xpose.msra.mxu1 %v363_v59 }
  0x5f   : > { %536 = vmatpush.xpose.msra.mxu2 %v379_v60 }
  0x60   : > { %592 = vmatpush.xpose.msra.mxu3 %v395_v61 }
  0x61   : > { %425 = vmatpush.xpose.msra.mxu0 %v346_v63 }
  0x62   : > { %481 = vmatpush.xpose.msra.mxu1 %v362_v0 }
  0x63   : > { %537 = vmatpush.xpose.msra.mxu2 %v378_v1 }
  0x64   : > { %593 = vmatpush.xpose.msra.mxu3 %v394_v2  ;;  %426 = vmatmul.f32.vlgmr.msra.gmra.mxu0 %v333_v3 }
  0x65   : > { %482 = vmatmul.f32.vlgmr.msra.gmra.mxu1 %v333_v3 }
  0x66   : > { %538 = vmatmul.f32.vlgmr.msra.gmra.mxu2 %v333_v3 }
  0x67   : > { %594 = vmatmul.f32.vlgmr.msra.gmra.mxu3 %v333_v3 }
  0x6c   : > { %429 = vmatmul.f32.gmra.mxu0 %v334_v5 }
  0x6d   : > { %485 = vmatmul.f32.gmra.mxu1 %v334_v5 }
  0x6e   : > { %541 = vmatmul.f32.gmra.mxu2 %v334_v5 }
  0x6f   : > { %597 = vmatmul.f32.gmra.mxu3 %v334_v5 }
  0x74   : > { %432 = vmatmul.f32.gmra.mxu0 %v335_v7 }
  0x75   : > { %488 = vmatmul.f32.gmra.mxu1 %v335_v7 }
  0x76   : > { %544 = vmatmul.f32.gmra.mxu2 %v335_v7 }
  0x77   : > { %600 = vmatmul.f32.gmra.mxu3 %v335_v7 }
  0x7c   : > { %435 = vmatmul.f32.gmra.mxu0 %v336_v8 }
  0x7d   : > { %491 = vmatmul.f32.gmra.mxu1 %v336_v8 }
  0x7e   : > { %547 = vmatmul.f32.gmra.mxu2 %v336_v8 }
  0x7f   : > { %603 = vmatmul.f32.gmra.mxu3 %v336_v8 }
  0x84   : > { %438 = vmatmul.f32.gmra.mxu0 %v337_v9 }
  0x85   : > { %494 = vmatmul.f32.gmra.mxu1 %v337_v9 }
  0x86   : > { %550 = vmatmul.f32.gmra.mxu2 %v337_v9 }
  0x87   : > { %606 = vmatmul.f32.gmra.mxu3 %v337_v9 }
  0x8c   : > { %441 = vmatmul.f32.gmra.mxu0 %v338_v11 }
  0x8d   : > { %497 = vmatmul.f32.gmra.mxu1 %v338_v11 }
  0x8e   : > { %553 = vmatmul.f32.gmra.mxu2 %v338_v11 }
  0x8f   : > { %609 = vmatmul.f32.gmra.mxu3 %v338_v11 }
  0x94   : > { %444 = vmatmul.f32.gmra.mxu0 %v339_v15 }
  0x95   : > { %500 = vmatmul.f32.gmra.mxu1 %v339_v15 }
  0x96   : > { %556 = vmatmul.f32.gmra.mxu2 %v339_v15 }
  0x97   : > { %612 = vmatmul.f32.gmra.mxu3 %v339_v15 }
  0x99   : > { %v670_v14 = vpop.permute.xlu2 %669 }
  0x9c   : > { %447 = vmatmul.f32.gmra.mxu0 %v340_v18 }
  0x9d   : > { %503 = vmatmul.f32.gmra.mxu1 %v340_v18 }
  0x9e   : > { %559 = vmatmul.f32.gmra.mxu2 %v340_v18 }
  0x9f   : > { %615 = vmatmul.f32.gmra.mxu3 %v340_v18 }
  0xa1   : > { %v675_v27 = vpop.permute.xlu2 %674 }
  0xa4   : > { %450 = vmatmul.f32.gmra.mxu0 %v341_v20 }
  0xa5   : > { %506 = vmatmul.f32.gmra.mxu1 %v341_v20 }
  0xa6   : > { %562 = vmatmul.f32.gmra.mxu2 %v341_v20 }
  0xa7   : > { %618 = vmatmul.f32.gmra.mxu3 %v341_v20 }
  0xa8   : > { %v650_v28 = vpop.permute.xlu0 %649 }
  0xab   : > { %v660_v52 = vpop.permute.xlu1 %659 }
  0xac   : > { %453 = vmatmul.f32.gmra.mxu0 %v342_v22 }
  0xad   : > { %509 = vmatmul.f32.gmra.mxu1 %v342_v22 }
  0xae   : > { %565 = vmatmul.f32.gmra.mxu2 %v342_v22 }
  0xaf   : > { %621 = vmatmul.f32.gmra.mxu3 %v342_v22 }
  0xb0   : > { %v655_v39 = vpop.permute.xlu0 %654 }
  0xb3   : > { %v665_v1 = vpop.permute.xlu1 %664 }
  0xb4   : > { %456 = vmatmul.f32.gmra.mxu0 %v343_v24 }
  0xb5   : > { %512 = vmatmul.f32.gmra.mxu1 %v343_v24 }
  0xb6   : > { %568 = vmatmul.f32.gmra.mxu2 %v343_v24 }
  0xb7   : > { %624 = vmatmul.f32.gmra.mxu3 %v343_v24 }
  0xbc   : > { %459 = vmatmul.f32.gmra.mxu0 %v344_v25 }
  0xbd   : > { %515 = vmatmul.f32.gmra.mxu1 %v344_v25 }
  0xbe   : > { %571 = vmatmul.f32.gmra.mxu2 %v344_v25 }
  0xbf   : > { %627 = vmatmul.f32.gmra.mxu3 %v344_v25 }
  0xc4   : > { %462 = vmatmul.f32.gmra.mxu0 %v345_v26 }
  0xc5   : > { %518 = vmatmul.f32.gmra.mxu1 %v345_v26 }
  0xc6   : > { %574 = vmatmul.f32.gmra.mxu2 %v345_v26 }
  0xc7   : > { %630 = vmatmul.f32.gmra.mxu3 %v345_v26 }
  0xe1   : > { %v427_v31 = vpop.f32.mrf.mxu0 }
  0xe2   : > { %v483_v32 = vpop.f32.mrf.mxu1  ;;  %v712_v33 = vmul.f32 %v650_v28, %v427_v31 }
  0xe3   : > { %v713_v34 = vmul.f32 %v650_v28, %v483_v32 }
  0xe4   : > { %v774_v35 = vmul.f32 %v1382_v29, %v712_v33 }
  0xe5   : > { %v775_v36 = vmul.f32 %v1384_v30, %v713_v34 }
  0xe6   : > { %826 = vst [vmem:[%s1388_s8] sm:$0xff] %v774_v35 }
  0xe7   : > { %827 = vst [vmem:[%s1388_s8 + $0x8] sm:$0xff] %v775_v36 }
  0xe9   : > { %v539_v40 = vpop.f32.mrf.mxu2  ;;  %v430_v44 = vpop.f32.mrf.mxu0 }
  0xea   : > { %v595_v41 = vpop.f32.mrf.mxu3  ;;  %v714_v42 = vmul.f32 %v650_v28, %v539_v40  ;;  %v486_v45 = vpop.f32.mrf.mxu1  ;;  %v716_v46 = vmul.f32 %v655_v39, %v430_v44 }
  0xeb   : > { %v715_v43 = vmul.f32 %v650_v28, %v595_v41  ;;  %v717_v47 = vmul.f32 %v655_v39, %v486_v45  ;;  %v680_v44 = vpop.permute.xlu0 %679 }
  0xec   : > { %v776_v48 = vmul.f32 %v1392_v37, %v714_v42  ;;  %v778_v50 = vmul.f32 %v1382_v29, %v716_v46 }
  0xed   : > { %v777_v49 = vmul.f32 %v1394_v38, %v715_v43  ;;  %v779_v51 = vmul.f32 %v1384_v30, %v717_v47 }
  0xee   : > { %828 = vst [vmem:[%s1388_s8 + $0x10] sm:$0xff] %v776_v48 }
  0xef   : > { %829 = vst [vmem:[%s1388_s8 + $0x18] sm:$0xff] %v777_v49 }
  0xf0   : > { %830 = vst [vmem:[%s1388_s8 + $0x20] sm:$0xff] %v778_v50 }
  0xf1   : > { %831 = vst [vmem:[%s1388_s8 + $0x28] sm:$0xff] %v779_v51  ;;  %v542_v53 = vpop.f32.mrf.mxu2  ;;  %v433_v57 = vpop.f32.mrf.mxu0 }
  0xf2   : > { %v598_v54 = vpop.f32.mrf.mxu3  ;;  %v718_v55 = vmul.f32 %v655_v39, %v542_v53  ;;  %v489_v58 = vpop.f32.mrf.mxu1  ;;  %v720_v59 = vmul.f32 %v660_v52, %v433_v57 }
  0xf3   : > { %v719_v56 = vmul.f32 %v655_v39, %v598_v54  ;;  %v721_v60 = vmul.f32 %v660_v52, %v489_v58  ;;  %v685_v57 = vpop.permute.xlu1 %684 }
  0xf4   : > { %v780_v61 = vmul.f32 %v1392_v37, %v718_v55  ;;  %v782_v63 = vmul.f32 %v1382_v29, %v720_v59 }
  0xf5   : > { %v781_v62 = vmul.f32 %v1394_v38, %v719_v56  ;;  %v783_v0 = vmul.f32 %v1384_v30, %v721_v60 }
  0xf6   : > { %832 = vst [vmem:[%s1388_s8 + $0x30] sm:$0xff] %v780_v61 }
  0xf7   : > { %833 = vst [vmem:[%s1388_s8 + $0x38] sm:$0xff] %v781_v62 }
  0xf8   : > { %834 = vst [vmem:[%s1388_s8 + $0x40] sm:$0xff] %v782_v63 }
  0xf9   : > { %835 = vst [vmem:[%s1388_s8 + $0x48] sm:$0xff] %v783_v0  ;;  %v545_v2 = vpop.f32.mrf.mxu2  ;;  %v436_v6 = vpop.f32.mrf.mxu0 }
  0xfa   : > { %v601_v3 = vpop.f32.mrf.mxu3  ;;  %v722_v4 = vmul.f32 %v660_v52, %v545_v2  ;;  %v492_v7 = vpop.f32.mrf.mxu1  ;;  %v724_v8 = vmul.f32 %v665_v1, %v436_v6 }
  0xfb   : > { %v723_v5 = vmul.f32 %v660_v52, %v601_v3  ;;  %v725_v9 = vmul.f32 %v665_v1, %v492_v7  ;;  %v690_v6 = vpop.permute.xlu2 %689 }
  0xfc   : > { %v784_v10 = vmul.f32 %v1392_v37, %v722_v4  ;;  %v786_v12 = vmul.f32 %v1382_v29, %v724_v8 }
  0xfd   : > { %v785_v11 = vmul.f32 %v1394_v38, %v723_v5  ;;  %v787_v13 = vmul.f32 %v1384_v30, %v725_v9 }
  0xfe   : > { %836 = vst [vmem:[%s1388_s8 + $0x50] sm:$0xff] %v784_v10 }
  0xff   : > { %837 = vst [vmem:[%s1388_s8 + $0x58] sm:$0xff] %v785_v11 }
 0x100   : > { %838 = vst [vmem:[%s1388_s8 + $0x60] sm:$0xff] %v786_v12 }
 0x101   : > { %839 = vst [vmem:[%s1388_s8 + $0x68] sm:$0xff] %v787_v13  ;;  %v548_v15 = vpop.f32.mrf.mxu2  ;;  %v439_v19 = vpop.f32.mrf.mxu0 }
 0x102   : > { %v604_v16 = vpop.f32.mrf.mxu3  ;;  %v726_v17 = vmul.f32 %v665_v1, %v548_v15  ;;  %v495_v20 = vpop.f32.mrf.mxu1  ;;  %v728_v21 = vmul.f32 %v670_v14, %v439_v19 }
 0x103   : > { %v727_v18 = vmul.f32 %v665_v1, %v604_v16  ;;  %v729_v22 = vmul.f32 %v670_v14, %v495_v20  ;;  %v695_v19 = vpop.permute.xlu0 %694 }
 0x104   : > { %v788_v23 = vmul.f32 %v1392_v37, %v726_v17  ;;  %v790_v25 = vmul.f32 %v1382_v29, %v728_v21 }
 0x105   : > { %v789_v24 = vmul.f32 %v1394_v38, %v727_v18  ;;  %v791_v26 = vmul.f32 %v1384_v30, %v729_v22 }
 0x106   : > { %840 = vst [vmem:[%s1388_s8 + $0x70] sm:$0xff] %v788_v23 }
 0x107   : > { %841 = vst [vmem:[%s1388_s8 + $0x78] sm:$0xff] %v789_v24 }
 0x108   : > { %842 = vst [vmem:[%s1388_s8 + $0x80] sm:$0xff] %v790_v25 }
 0x109   : > { %843 = vst [vmem:[%s1388_s8 + $0x88] sm:$0xff] %v791_v26  ;;  %v551_v28 = vpop.f32.mrf.mxu2  ;;  %v442_v34 = vpop.f32.mrf.mxu0 }
 0x10a   : > { %v607_v31 = vpop.f32.mrf.mxu3  ;;  %v730_v32 = vmul.f32 %v670_v14, %v551_v28  ;;  %v498_v35 = vpop.f32.mrf.mxu1  ;;  %v732_v36 = vmul.f32 %v675_v27, %v442_v34 }
 0x10b   : > { %v731_v33 = vmul.f32 %v670_v14, %v607_v31  ;;  %v733_v39 = vmul.f32 %v675_v27, %v498_v35  ;;  %v700_v34 = vpop.permute.xlu1 %699 }
 0x10c   : > { %v792_v40 = vmul.f32 %v1392_v37, %v730_v32  ;;  %v794_v42 = vmul.f32 %v1382_v29, %v732_v36 }
 0x10d   : > { %v793_v41 = vmul.f32 %v1394_v38, %v731_v33  ;;  %v795_v43 = vmul.f32 %v1384_v30, %v733_v39 }
 0x10e   : > { %844 = vst [vmem:[%s1388_s8 + $0x90] sm:$0xff] %v792_v40 }
 0x10f   : > { %845 = vst [vmem:[%s1388_s8 + $0x98] sm:$0xff] %v793_v41 }
 0x110   : > { %846 = vst [vmem:[%s1388_s8 + $0xa0] sm:$0xff] %v794_v42 }
 0x111   : > { %847 = vst [vmem:[%s1388_s8 + $0xa8] sm:$0xff] %v795_v43  ;;  %v554_v45 = vpop.f32.mrf.mxu2  ;;  %v445_v49 = vpop.f32.mrf.mxu0 }
 0x112   : > { %v610_v46 = vpop.f32.mrf.mxu3  ;;  %v734_v47 = vmul.f32 %v675_v27, %v554_v45  ;;  %v501_v50 = vpop.f32.mrf.mxu1  ;;  %v736_v51 = vmul.f32 %v680_v44, %v445_v49 }
 0x113   : > { %v735_v48 = vmul.f32 %v675_v27, %v610_v46  ;;  %v737_v52 = vmul.f32 %v680_v44, %v501_v50  ;;  %v705_v49 = vpop.permute.xlu2 %704 }
 0x114   : > { %v796_v53 = vmul.f32 %v1392_v37, %v734_v47  ;;  %v798_v55 = vmul.f32 %v1382_v29, %v736_v51 }
 0x115   : > { %v797_v54 = vmul.f32 %v1394_v38, %v735_v48  ;;  %v799_v56 = vmul.f32 %v1384_v30, %v737_v52 }
 0x116   : > { %848 = vst [vmem:[%s1388_s8 + $0xb0] sm:$0xff] %v796_v53 }
 0x117   : > { %849 = vst [vmem:[%s1388_s8 + $0xb8] sm:$0xff] %v797_v54 }
 0x118   : > { %850 = vst [vmem:[%s1388_s8 + $0xc0] sm:$0xff] %v798_v55 }
 0x119   : > { %851 = vst [vmem:[%s1388_s8 + $0xc8] sm:$0xff] %v799_v56  ;;  %v557_v58 = vpop.f32.mrf.mxu2  ;;  %v448_v62 = vpop.f32.mrf.mxu0 }
 0x11a   : > { %v613_v59 = vpop.f32.mrf.mxu3  ;;  %v738_v60 = vmul.f32 %v680_v44, %v557_v58  ;;  %v504_v63 = vpop.f32.mrf.mxu1  ;;  %v740_v0 = vmul.f32 %v685_v57, %v448_v62 }
 0x11b   : > { %v739_v61 = vmul.f32 %v680_v44, %v613_v59  ;;  %v741_v1 = vmul.f32 %v685_v57, %v504_v63  ;;  %v710_v62 = vpop.permute.xlu0 %709 }
 0x11c   : > { %v800_v2 = vmul.f32 %v1392_v37, %v738_v60  ;;  %v802_v4 = vmul.f32 %v1382_v29, %v740_v0 }
 0x11d   : > { %v801_v3 = vmul.f32 %v1394_v38, %v739_v61  ;;  %v803_v5 = vmul.f32 %v1384_v30, %v741_v1 }
 0x11e   : > { %852 = vst [vmem:[%s1388_s8 + $0xd0] sm:$0xff] %v800_v2 }
 0x11f   : > { %853 = vst [vmem:[%s1388_s8 + $0xd8] sm:$0xff] %v801_v3 }
 0x120   : > { %854 = vst [vmem:[%s1388_s8 + $0xe0] sm:$0xff] %v802_v4 }
 0x121   : > { %855 = vst [vmem:[%s1388_s8 + $0xe8] sm:$0xff] %v803_v5  ;;  %v560_v7 = vpop.f32.mrf.mxu2  ;;  %v451_v11 = vpop.f32.mrf.mxu0 }
 0x122   : > { %v616_v8 = vpop.f32.mrf.mxu3  ;;  %v742_v9 = vmul.f32 %v685_v57, %v560_v7  ;;  %v507_v12 = vpop.f32.mrf.mxu1  ;;  %v744_v13 = vmul.f32 %v690_v6, %v451_v11 }
 0x123   : > { %v743_v10 = vmul.f32 %v685_v57, %v616_v8  ;;  %v745_v14 = vmul.f32 %v690_v6, %v507_v12 }
 0x124   : > { %v804_v15 = vmul.f32 %v1392_v37, %v742_v9  ;;  %v806_v17 = vmul.f32 %v1382_v29, %v744_v13 }
 0x125   : > { %v805_v16 = vmul.f32 %v1394_v38, %v743_v10  ;;  %v807_v18 = vmul.f32 %v1384_v30, %v745_v14 }
 0x126   : > { %856 = vst [vmem:[%s1388_s8 + $0xf0] sm:$0xff] %v804_v15 }
 0x127   : > { %857 = vst [vmem:[%s1388_s8 + $0xf8] sm:$0xff] %v805_v16 }
 0x128   : > { %858 = vst [vmem:[%s1388_s8 + $0x100] sm:$0xff] %v806_v17 }
 0x129   : > { %859 = vst [vmem:[%s1388_s8 + $0x108] sm:$0xff] %v807_v18  ;;  %v563_v20 = vpop.f32.mrf.mxu2  ;;  %v454_v24 = vpop.f32.mrf.mxu0 }
 0x12a   : > { %v619_v21 = vpop.f32.mrf.mxu3  ;;  %v746_v22 = vmul.f32 %v690_v6, %v563_v20  ;;  %v510_v25 = vpop.f32.mrf.mxu1  ;;  %v748_v26 = vmul.f32 %v695_v19, %v454_v24 }
 0x12b   : > { %v747_v23 = vmul.f32 %v690_v6, %v619_v21  ;;  %v749_v27 = vmul.f32 %v695_v19, %v510_v25 }
 0x12c   : > { %v808_v28 = vmul.f32 %v1392_v37, %v746_v22  ;;  %v810_v32 = vmul.f32 %v1382_v29, %v748_v26 }
 0x12d   : > { %v809_v31 = vmul.f32 %v1394_v38, %v747_v23  ;;  %v811_v33 = vmul.f32 %v1384_v30, %v749_v27 }
 0x12e   : > { %860 = vst [vmem:[%s1388_s8 + $0x110] sm:$0xff] %v808_v28 }
 0x12f   : > { %861 = vst [vmem:[%s1388_s8 + $0x118] sm:$0xff] %v809_v31 }
 0x130   : > { %862 = vst [vmem:[%s1388_s8 + $0x120] sm:$0xff] %v810_v32 }
 0x131   : > { %863 = vst [vmem:[%s1388_s8 + $0x128] sm:$0xff] %v811_v33  ;;  %v566_v35 = vpop.f32.mrf.mxu2  ;;  %v457_v41 = vpop.f32.mrf.mxu0 }
 0x132   : > { %v622_v36 = vpop.f32.mrf.mxu3  ;;  %v750_v39 = vmul.f32 %v695_v19, %v566_v35  ;;  %v513_v42 = vpop.f32.mrf.mxu1  ;;  %v752_v43 = vmul.f32 %v700_v34, %v457_v41 }
 0x133   : > { %v751_v40 = vmul.f32 %v695_v19, %v622_v36  ;;  %v753_v44 = vmul.f32 %v700_v34, %v513_v42 }
 0x134   : > { %v812_v45 = vmul.f32 %v1392_v37, %v750_v39  ;;  %v814_v47 = vmul.f32 %v1382_v29, %v752_v43 }
 0x135   : > { %v813_v46 = vmul.f32 %v1394_v38, %v751_v40  ;;  %v815_v48 = vmul.f32 %v1384_v30, %v753_v44 }
 0x136   : > { %864 = vst [vmem:[%s1388_s8 + $0x130] sm:$0xff] %v812_v45 }
 0x137   : > { %865 = vst [vmem:[%s1388_s8 + $0x138] sm:$0xff] %v813_v46 }
 0x138   : > { %866 = vst [vmem:[%s1388_s8 + $0x140] sm:$0xff] %v814_v47 }
 0x139   : > { %867 = vst [vmem:[%s1388_s8 + $0x148] sm:$0xff] %v815_v48  ;;  %v569_v50 = vpop.f32.mrf.mxu2  ;;  %v460_v54 = vpop.f32.mrf.mxu0 }
 0x13a   : > { %v625_v51 = vpop.f32.mrf.mxu3  ;;  %v754_v52 = vmul.f32 %v700_v34, %v569_v50  ;;  %v516_v55 = vpop.f32.mrf.mxu1  ;;  %v756_v56 = vmul.f32 %v705_v49, %v460_v54 }
 0x13b   : > { %v755_v53 = vmul.f32 %v700_v34, %v625_v51  ;;  %v757_v57 = vmul.f32 %v705_v49, %v516_v55 }
 0x13c   : > { %v816_v58 = vmul.f32 %v1392_v37, %v754_v52  ;;  %v818_v60 = vmul.f32 %v1382_v29, %v756_v56 }
 0x13d   : > { %v817_v59 = vmul.f32 %v1394_v38, %v755_v53  ;;  %v819_v61 = vmul.f32 %v1384_v30, %v757_v57 }
 0x13e   : > { %868 = vst [vmem:[%s1388_s8 + $0x150] sm:$0xff] %v816_v58 }
 0x13f   : > { %869 = vst [vmem:[%s1388_s8 + $0x158] sm:$0xff] %v817_v59 }
 0x140   : > { %870 = vst [vmem:[%s1388_s8 + $0x160] sm:$0xff] %v818_v60 }
 0x141   : > { %871 = vst [vmem:[%s1388_s8 + $0x168] sm:$0xff] %v819_v61  ;;  %v572_v63 = vpop.f32.mrf.mxu2  ;;  %v463_v3 = vpop.f32.mrf.mxu0 }
 0x142   : > { %v628_v0 = vpop.f32.mrf.mxu3  ;;  %v758_v1 = vmul.f32 %v705_v49, %v572_v63  ;;  %v519_v4 = vpop.f32.mrf.mxu1  ;;  %v760_v5 = vmul.f32 %v710_v62, %v463_v3 }
 0x143   : > { %v759_v2 = vmul.f32 %v705_v49, %v628_v0  ;;  %v761_v6 = vmul.f32 %v710_v62, %v519_v4 }
 0x144   : > { %v820_v7 = vmul.f32 %v1392_v37, %v758_v1  ;;  %v822_v9 = vmul.f32 %v1382_v29, %v760_v5 }
 0x145   : > { %v821_v8 = vmul.f32 %v1394_v38, %v759_v2  ;;  %v823_v10 = vmul.f32 %v1384_v30, %v761_v6 }
 0x146   : > { %872 = vst [vmem:[%s1388_s8 + $0x170] sm:$0xff] %v820_v7 }
 0x147   : > { %873 = vst [vmem:[%s1388_s8 + $0x178] sm:$0xff] %v821_v8 }
 0x148   : > { %874 = vst [vmem:[%s1388_s8 + $0x180] sm:$0xff] %v822_v9 }
 0x149   : > { %875 = vst [vmem:[%s1388_s8 + $0x188] sm:$0xff] %v823_v10  ;;  %v575_v11 = vpop.f32.mrf.mxu2 }
 0x14a   : > { %v631_v12 = vpop.f32.mrf.mxu3  ;;  %v762_v13 = vmul.f32 %v710_v62, %v575_v11 }
 0x14b   : > { %v763_v14 = vmul.f32 %v710_v62, %v631_v12  ;;  %885 = sbr.rel (!%p1300_p4) target bundleno = 367 (0x16f), region = 44 }
 0x14c   : > { %v824_v15 = vmul.f32 %v1392_v37, %v762_v13 }
 0x14d   : > { %v825_v16 = vmul.f32 %v1394_v38, %v763_v14 }
 0x14e   : > { %876 = vst [vmem:[%s1388_s8 + $0x190] sm:$0xff] %v824_v15 }
 0x14f   : > { %877 = vst [vmem:[%s1388_s8 + $0x198] sm:$0xff] %v825_v16 }
 0x150   : > { %s1581_s10 = smov (!%p889_p0, %s888_s10), 13 }
 0x151   : > { %s1035_s12 = sshll.u32 %s1581_s10, 5 }
 0x152   : > { %s893_s13 = ssub.s32 416, %s1035_s12 }
 0x153   : > { %s894_s14 = sshll.u32 %s893_s13, 4 }
 0x154   : > { %895 = vsyncadd %s1498_s9, %s894_s14  ;;  %p1507_p1 = scmp.ne.s32.totalorder %s1035_s12, 0  ;;  %s1038_s25 = smul.u32 416, %s1215_s18 }
 0x155   : > { %s902_s22 = sshll.u32 %s1388_s8, 4  ;;  %s1032_s11 = sshll.u32 %s1581_s10, 9  ;;  %s1517_s22 = int_to_ptr.vmem [resolvable:$true] %s902_s22 }
 0x156   : > { %s900_s29 = scalar_lea.hbm %s1568_s4, %s1038_s25  ;;  %s1130_s5 = sshra.s32 %s1517_s22, 4  ;;  %s1131_s5 = int_to_ptr.vmem [resolvable:$true] %s1130_s5 }
 0x157   : > { %s904_s30 = sshll.u32 %s900_s29, 4  ;;  %s1132_s6 = sshrl.u32 %s1032_s11, 4  ;;  %s1519_s30 = int_to_ptr.hbm [resolvable:$true] %s904_s30 }
 0x158   : > { %s1137_s7 = scalar_lea.vmem %s1131_s5, %s1132_s6  ;;  %s1229_s18 = smov [#allocation5]  }
 0x159   : > { %p1138_p2 = scmp.ne.s32.totalorder %s1131_s5, %s1137_s7  ;;  %s1141_s8 = scalar_lea.vmem %s1229_s18, 832 }
 0x15a   : > { %p1143_p5 = scmp.lt.s32.totalorder %s1141_s8, %s1137_s7 }
 0x15b   : > { %p1139_p3 = pnand %p1138_p2, %p1507_p1 }
 0x15d   : > { %p1140_p4 = pneg %p1139_p3 }
 0x15f   : > { %p1145_p6 = pnand %p1143_p5, %p1140_p4 }
 0x161   : > { %1148 = shalt.err (!%p1145_p6)
}
 0x162   : > { %s1149_s12 = sshra.s32 %s1519_s30, 4  ;;  %s1160_s24 = scalar_lea.hbm %s1568_s4, 800  ;;  %s1150_s12 = int_to_ptr.hbm [resolvable:$true] %s1149_s12 }
 0x163   : > { %s1156_s13 = scalar_lea.hbm %s1150_s12, %s1132_s6  ;;  %p1161_p11 = scmp.lt.s32.totalorder %s1150_s12, %s1568_s4 }
 0x164   : > { %p1157_p7 = scmp.ne.s32.totalorder %s1150_s12, %s1156_s13  ;;  %p1162_p12 = scmp.lt.s32.totalorder %s1160_s24, %s1156_s13 }
 0x166   : > { %p1158_p9 = pnand %p1157_p7, %p1507_p1  ;;  %p1163_p13 = por %p1162_p12, %p1161_p11 }
 0x168   : > { %p1159_p10 = pneg %p1158_p9 }
 0x16a   : > { %p1164_p0 = pnand %p1163_p13, %p1159_p10 }
 0x16c   : > { %1167 = shalt.err (!%p1164_p0)
}
 0x16d   : > { %s1230_s5 = smov 512   ;;  %s1231_s6 = smov 32  }
 0x16e   : > { %910 = dma.vmem_to_hbm [thread:$0]  (%p1507_p1), %s1517_s22, %s1032_s11, %s1519_s30, %s1498_s9, %s1230_s5, %s1230_s5, %s1231_s6  }
 0x16f PF: > { %p1048_p2 = scmp.ge.s32.totalorder %s1223_s20, 2  ;;  %s919_s7 = sand.u32 1, %s1203_s15  }
 0x170   : > { %s920_s18 = scalar_lea.sflag [#allocation4], %s919_s7 }
 0x171   : > { %p1044_p3 = pnand %p1048_p2, %p1307_p8 }
 0x173   : > { %p1045_p4 = pneg %p1044_p3 }
 0x175   : > { %1198 = dma.done.wait (%p1045_p4), %s920_s18, 6656  }
 0x176   : > { %1200 = vsyncadd (%p1045_p4), %s920_s18, 4294960640  ;;  %s18_s20 = sadd.s32 1, %s1223_s20   ;;  %s1573_s15 = smov %s1207_s16 }
 0x177   : > { %p15_p5 = scmp.ge.s32.totalorder %s18_s20, 4   ;;  %s1574_s16 = smov %s1211_s17 }
 0x178   : > { %s1575_s17 = smov %s1313_s28  ;;  %s1576_s18 = smov %s1219_s19 }
 0x179   : > { %s1577_s19 = smov %s1579_s23  ;;  %17 = sbr.rel (!%p15_p5) target bundleno = 5 (0x5), region = 83 }
 0x17e   :  { %926 = vsyncpa [#allocation3], 1 }
 0x17f   :  { %928 = vsyncpa [#allocation3 + $0x1], 1 }
 0x180   :  { %929 = vsyncpa [#allocation4], 1 }
 0x181   :  { %931 = vsyncpa [#allocation4 + $0x1], 1 }

</bundles_post_ra>
